<compile_context>
chip_gen: v7x
topology: tpu7x:2x2x1
jax: 0.10.0
libtpu: 0.0.40
codegen_flags: <defaults>
</compile_context>

<pallas_src>
import functools
import math

import jax
import jax.numpy as jnp
from jax import lax
from jax.experimental import pallas as pl
from jax.experimental.pallas import tpu as pltpu


# ---------------------------------------------------------------------------
# Helpers
# ---------------------------------------------------------------------------
def _pick_q_tile(n, target=512):
    """Largest q-tile <= target that divides N (multiple of 8), else N."""
    if n <= target:
        return n
    for cand in (1024, 512, 256, 128, 64, 32, 16, 8):
        if cand <= target and n % cand == 0:
            return cand
    return n


def _default_vmem_limit():
    """Generation-dependent VMEM limit: ~3/4 of physical, capped at 100 MiB."""
    try:
        cap = int(pltpu.get_tpu_info().vmem_capacity_bytes)
        return min((cap * 3) // 4, 100 * 1024 * 1024)
    except Exception:
        return 48 * 1024 * 1024  # conservative: fits every generation


# ---------------------------------------------------------------------------
# Fused kernel: per (batch, q-tile) step
# ---------------------------------------------------------------------------
def _mha_qtiled_kernel(x_ref, mask_ref, wq_ref, bq_ref, wk_ref, bk_ref,
                       wv_ref, bv_ref, wo_ref, bo_ref, o_ref, kv_ref,
                       *, num_heads, q_tile, compute_dtype):
    # x_ref:    (1, N, E)   f32   full sequence of this batch element
    # mask_ref: (1, tq, N)  bool  (True = may attend), this q-tile's rows
    # wq/wk/wv/wo_ref: (E, E) compute_dtype (PyTorch layout, wq pre-scaled)
    # bq/bk/bv/bo_ref: (1, E) f32 (bq pre-scaled)
    # o_ref:    (1, tq, E)
    # kv_ref:   VMEM scratch (2, N, E) compute_dtype, persists across q-tiles
    qi = pl.program_id(1)
    _, N, E = x_ref.shape
    Dh = E // num_heads
    cdt = compute_dtype

    # ---- K / V for the whole sequence, computed once per batch element ----
    @pl.when(qi == 0)
    def _():
        x_all = x_ref[0].astype(cdt)                                  # (N, E)
        k = lax.dot_general(x_all, wk_ref[...], (((1,), (1,)), ((), ())),
                            preferred_element_type=jnp.float32) + bk_ref[...]
        v = lax.dot_general(x_all, wv_ref[...], (((1,), (1,)), ((), ())),
                            preferred_element_type=jnp.float32) + bv_ref[...]
        kv_ref[0] = k.astype(cdt)
        kv_ref[1] = v.astype(cdt)

    # ---- Q projection for this q-tile (softmax scale folded into wq/bq) ----
    row0 = pl.multiple_of(qi * q_tile, q_tile)
    x_tile = x_ref[0, pl.ds(row0, q_tile), :].astype(cdt)             # (tq, E)
    q = (lax.dot_general(x_tile, wq_ref[...], (((1,), (1,)), ((), ())),
                         preferred_element_type=jnp.float32)
         + bq_ref[...]).astype(cdt)                                   # (tq, E)

    # ---- additive mask for this tile only (cheap VPU where, no big residency)
    add_mask = jnp.where(mask_ref[0], jnp.float32(0.0), jnp.float32(-1e30))

    k_all = kv_ref[0]                                                 # (N, E)
    v_all = kv_ref[1]                                                 # (N, E)
    w_o = wo_ref[...]                                                 # (E, E)

    # ---- per-head attention, output projection fused into the loop ----
    acc = None
    for h in range(num_heads):                       # static unroll over heads
        lo, hi = h * Dh, (h + 1) * Dh
        # QK^T contracting the Dh axes directly (no in-kernel transpose).
        s = lax.dot_general(q[:, lo:hi], k_all[:, lo:hi],
                            (((1,), (1,)), ((), ())),
                            preferred_element_type=jnp.float32)       # (tq, N)
        s = s + add_mask
        s = s - jnp.max(s, axis=-1, keepdims=True)                    # stable softmax (f32)
        p = jnp.exp(s)
        p = p * pl.reciprocal(jnp.sum(p, axis=-1, keepdims=True), approx=True)
        # TODO(synk): nn.MultiheadAttention applies dropout(p=0.1) to `p` in
        # training mode only; omitted here (eval/inference semantics).
        ctx_h = jnp.dot(p.astype(cdt), v_all[:, lo:hi],
                        preferred_element_type=jnp.float32)           # (tq, Dh)
        # Fused output projection: out += ctx_h @ W_o[:, lo:hi]^T
        contrib = lax.dot_general(ctx_h.astype(cdt), w_o[:, lo:hi],
                                  (((1,), (1,)), ((), ())),
                                  preferred_element_type=jnp.float32)  # (tq, E)
        acc = contrib if acc is None else acc + contrib

    o_ref[0] = (acc + bo_ref[...]).astype(o_ref.dtype)                # lane-dense


# ---------------------------------------------------------------------------
# Wrapper
# ---------------------------------------------------------------------------
def masked_mha_forward(x, attn_mask, params, num_heads,
                       compute_dtype=jnp.bfloat16, q_tile_target=512):
    B, N, E = x.shape
    assert E % num_heads == 0
    Dh = E // num_heads

    if attn_mask is None:
        attn_mask = jnp.ones((B, N, N), dtype=jnp.bool_)
    attn_mask = attn_mask.astype(jnp.bool_)

    q_tile = _pick_q_tile(N, q_tile_target)
    num_q_tiles = N // q_tile

    # Weights stay in PyTorch layout; softmax scale folded into the Q rows;
    # weights cast once (wrapper-side) to the MXU compute dtype. Biases stay
    # f32 (added to the f32 accumulators in-kernel).
    scale = 1.0 / math.sqrt(Dh)
    w_in = params["in_proj_weight"]                      # (3E, E)
    b_in = params["in_proj_bias"]                        # (3E,)
    w_q = (w_in[0 * E:1 * E] * scale).astype(compute_dtype)
    w_k = w_in[1 * E:2 * E].astype(compute_dtype)
    w_v = w_in[2 * E:3 * E].astype(compute_dtype)
    b_q = (b_in[0 * E:1 * E] * scale).reshape(1, E).astype(jnp.float32)
    b_k = b_in[1 * E:2 * E].reshape(1, E).astype(jnp.float32)
    b_v = b_in[2 * E:3 * E].reshape(1, E).astype(jnp.float32)
    w_o = params["out_proj_weight"].astype(compute_dtype)
    b_o = params["out_proj_bias"].reshape(1, E).astype(jnp.float32)

    kernel = functools.partial(
        _mha_qtiled_kernel,
        num_heads=num_heads, q_tile=q_tile, compute_dtype=compute_dtype)

    # Resident weights/biases: constant index_map -> single-buffered.
    def wspec(shape):
        return pl.BlockSpec(shape, lambda b, qi: (0, 0),
                            pipeline_mode=pl.Buffered(1))

    return pl.pallas_call(
        kernel,
        out_shape=jax.ShapeDtypeStruct((B, N, E), x.dtype),
        grid_spec=pltpu.PrefetchScalarGridSpec(
            num_scalar_prefetch=0,
            grid=(B, num_q_tiles),
            in_specs=[
                # full sequence (re-DMA'd only when the batch index changes)
                pl.BlockSpec((1, N, E), lambda b, qi: (b, 0, 0)),
                # bool mask rows for this q-tile (1 byte/elem)
                pl.BlockSpec((1, q_tile, N), lambda b, qi: (b, qi, 0)),
                wspec((E, E)), wspec((1, E)),      # w_q, b_q
                wspec((E, E)), wspec((1, E)),      # w_k, b_k
                wspec((E, E)), wspec((1, E)),      # w_v, b_v
                wspec((E, E)), wspec((1, E)),      # w_o, b_o
            ],
            out_specs=pl.BlockSpec((1, q_tile, E), lambda b, qi: (b, qi, 0)),
            scratch_shapes=[pltpu.VMEM((2, N, E), compute_dtype)],  # K/V scratch
        ),
        compiler_params=pltpu.CompilerParams(
            dimension_semantics=("parallel", "arbitrary"),
            vmem_limit_bytes=_default_vmem_limit(),
        ),
    )(x, attn_mask, w_q, b_q, w_k, b_k, w_v, b_v, w_o, b_o)


# ---------------------------------------------------------------------------
# Pure-JAX reference (matches the PyTorch additive-mask MHA, eval mode)
# ---------------------------------------------------------------------------
def reference_forward(x, attn_mask, params, num_heads):
    B, N, E = x.shape
    H = num_heads
    Dh = E // H
    qkv = x @ params["in_proj_weight"].T + params["in_proj_bias"]
    qkv = qkv.reshape(B, N, 3, H, Dh)
    q = jnp.transpose(qkv[:, :, 0], (0, 2, 1, 3))
    k = jnp.transpose(qkv[:, :, 1], (0, 2, 1, 3))
    v = jnp.transpose(qkv[:, :, 2], (0, 2, 1, 3))
    float_mask = (~attn_mask).astype(jnp.float32) * jnp.float32(-1e30)
    s = jnp.einsum("bhqd,bhkd->bhqk", q, k) / math.sqrt(Dh)
    s = s + float_mask[:, None, :, :]
    p = jax.nn.softmax(s, axis=-1)
    ctx = jnp.einsum("bhqk,bhkd->bhqd", p, v)
    ctx = jnp.transpose(ctx, (0, 2, 1, 3)).reshape(B, N, E)
    return ctx @ params["out_proj_weight"].T + params["out_proj_bias"]


# ---------------------------------------------------------------------------
# Deterministic parameter init + smoke test
# ---------------------------------------------------------------------------
def init_params(key, embed_dim):
    k1, k2, k3, k4 = jax.random.split(key, 4)
    bound = 1.0 / math.sqrt(embed_dim)
    return {
        "in_proj_weight": jax.random.uniform(
            k1, (3 * embed_dim, embed_dim), jnp.float32, -bound, bound),
        "in_proj_bias": jax.random.uniform(
            k2, (3 * embed_dim,), jnp.float32, -bound, bound),
        "out_proj_weight": jax.random.uniform(
            k3, (embed_dim, embed_dim), jnp.float32, -bound, bound),
        "out_proj_bias": jax.random.uniform(
            k4, (embed_dim,), jnp.float32, -bound, bound),
    }


if __name__ == "__main__":
    B, N, E, H = 2, 8, 32, 4

    key = jax.random.PRNGKey(0)
    kx, km, kp = jax.random.split(key, 3)

    x = jax.random.normal(kx, (B, N, E), jnp.float32)
    # boolean mask, True = may attend; guarantee each row has at least one True
    attn_mask = jax.random.bernoulli(km, 0.7, (B, N, N))
    attn_mask = attn_mask | jnp.eye(N, dtype=bool)[None, :, :]

    params = init_params(kp, E)
    ref = reference_forward(x, attn_mask, params, H)

    # f32 MXU-operand path (tolerance covers the approx EUP reciprocal).
    out_f32 = jax.block_until_ready(
        masked_mha_forward(x, attn_mask, params, H, compute_dtype=jnp.float32))
    assert out_f32.shape == (B, N, E)
    assert jnp.allclose(out_f32, ref, atol=1e-2, rtol=1e-2), "f32 mismatch vs reference"

    # Default path: bf16 MXU operands, f32 accumulation (v5e/v6e/v7x native).
    out_bf16 = jax.block_until_ready(masked_mha_forward(x, attn_mask, params, H))
    assert out_bf16.shape == (B, N, E)
    assert jnp.allclose(out_bf16, ref, atol=1e-1, rtol=1e-1), "bf16 mismatch vs reference"

    print("KERNEL_OK")
</pallas_src>

<mosaic_0001>
module attributes {stable_mosaic.version = 11 : i64} {
  func.func @_mha_qtiled_kernel(%arg0: i32, %arg1: i32, %arg2: memref<1x8x32xf32, #tpu.memory_space<vmem>>, %arg3: memref<1x8x8xi32, #tpu.memory_space<vmem>>, %arg4: memref<32x32xf32, #tpu.memory_space<vmem>>, %arg5: memref<1x32xf32, #tpu.memory_space<vmem>>, %arg6: memref<32x32xf32, #tpu.memory_space<vmem>>, %arg7: memref<1x32xf32, #tpu.memory_space<vmem>>, %arg8: memref<32x32xf32, #tpu.memory_space<vmem>>, %arg9: memref<1x32xf32, #tpu.memory_space<vmem>>, %arg10: memref<32x32xf32, #tpu.memory_space<vmem>>, %arg11: memref<1x32xf32, #tpu.memory_space<vmem>>, %arg12: memref<1x8x32xf32, #tpu.memory_space<vmem>>, %arg13: memref<2x8x32xf32, #tpu.memory_space<vmem>>) attributes {dimension_semantics = [#tpu.dimension_semantics<parallel>, #tpu.dimension_semantics<arbitrary>], iteration_bounds = array<i64: 2, 1>, scalar_prefetch = 0 : i64, scratch_operands = 1 : i64, tpu.core_type = #tpu.core_type<tc>, window_params = [{transform_indices = @transform_0, window_bounds = array<i64: 1, 8, 32>}, {transform_indices = @transform_1, window_bounds = array<i64: 1, 8, 8>}, {pipeline_mode = #tpu.pipeline_mode<synchronous>, transform_indices = @transform_2, window_bounds = array<i64: 32, 32>}, {pipeline_mode = #tpu.pipeline_mode<synchronous>, transform_indices = @transform_3, window_bounds = array<i64: 1, 32>}, {pipeline_mode = #tpu.pipeline_mode<synchronous>, transform_indices = @transform_4, window_bounds = array<i64: 32, 32>}, {pipeline_mode = #tpu.pipeline_mode<synchronous>, transform_indices = @transform_5, window_bounds = array<i64: 1, 32>}, {pipeline_mode = #tpu.pipeline_mode<synchronous>, transform_indices = @transform_6, window_bounds = array<i64: 32, 32>}, {pipeline_mode = #tpu.pipeline_mode<synchronous>, transform_indices = @transform_7, window_bounds = array<i64: 1, 32>}, {pipeline_mode = #tpu.pipeline_mode<synchronous>, transform_indices = @transform_8, window_bounds = array<i64: 32, 32>}, {pipeline_mode = #tpu.pipeline_mode<synchronous>, transform_indices = @transform_9, window_bounds = array<i64: 1, 32>}, {transform_indices = @transform_10, window_bounds = array<i64: 1, 8, 32>}]} {
    %c0_i32 = arith.constant 0 : i32
    %0 = arith.cmpi eq, %arg1, %c0_i32 : i32
    %1 = arith.extui %0 : i1 to i32
    %c0_i32_0 = arith.constant 0 : i32
    %2 = arith.cmpi ne, %1, %c0_i32_0 : i32
    scf.if %2 {
      %c0_44 = arith.constant 0 : index
      %c0_45 = arith.constant 0 : index
      %c0_46 = arith.constant 0 : index
      %105 = vector.load %arg2[%c0_44, %c0_45, %c0_46] : memref<1x8x32xf32, #tpu.memory_space<vmem>>, vector<1x8x32xf32>
      %106 = vector.shape_cast %105 : vector<1x8x32xf32> to vector<8x32xf32>
      %c0_47 = arith.constant 0 : index
      %c0_48 = arith.constant 0 : index
      %107 = vector.load %arg6[%c0_47, %c0_48] : memref<32x32xf32, #tpu.memory_space<vmem>>, vector<32x32xf32>
      %cst_49 = arith.constant dense<0.000000e+00> : vector<8x32xf32>
      %108 = tpu.matmul %106, %107, %cst_49 {dimension_numbers = #tpu.dot_dimension_numbers<[1], [1], [0], [0], [0, 0, 1, 0], [], []>} : vector<8x32xf32>, vector<32x32xf32>, vector<8x32xf32> -> vector<8x32xf32>
      %c0_50 = arith.constant 0 : index
      %c0_51 = arith.constant 0 : index
      %109 = vector.load %arg7[%c0_50, %c0_51] : memref<1x32xf32, #tpu.memory_space<vmem>>, vector<1x32xf32>
      %110 = vector.broadcast %109 : vector<1x32xf32> to vector<8x32xf32>
      %111 = arith.addf %108, %110 : vector<8x32xf32>
      %c0_52 = arith.constant 0 : index
      %c0_53 = arith.constant 0 : index
      %112 = vector.load %arg8[%c0_52, %c0_53] : memref<32x32xf32, #tpu.memory_space<vmem>>, vector<32x32xf32>
      %cst_54 = arith.constant dense<0.000000e+00> : vector<8x32xf32>
      %113 = tpu.matmul %106, %112, %cst_54 {dimension_numbers = #tpu.dot_dimension_numbers<[1], [1], [0], [0], [0, 0, 1, 0], [], []>} : vector<8x32xf32>, vector<32x32xf32>, vector<8x32xf32> -> vector<8x32xf32>
      %c0_55 = arith.constant 0 : index
      %c0_56 = arith.constant 0 : index
      %114 = vector.load %arg9[%c0_55, %c0_56] : memref<1x32xf32, #tpu.memory_space<vmem>>, vector<1x32xf32>
      %115 = vector.broadcast %114 : vector<1x32xf32> to vector<8x32xf32>
      %116 = arith.addf %113, %115 : vector<8x32xf32>
      %c0_57 = arith.constant 0 : index
      %c0_58 = arith.constant 0 : index
      %c0_59 = arith.constant 0 : index
      %117 = vector.load %arg13[%c0_57, %c0_58, %c0_59] : memref<2x8x32xf32, #tpu.memory_space<vmem>>, vector<1x8x32xf32>
      %118 = vector.shape_cast %117 : vector<1x8x32xf32> to vector<8x32xf32>
      %119 = vector.shape_cast %111 : vector<8x32xf32> to vector<1x8x32xf32>
      tpu.vector_store %arg13[%c0_57, %c0_58, %c0_59], %119 {strides = array<i32>} : memref<2x8x32xf32, #tpu.memory_space<vmem>>, vector<1x8x32xf32>,
      %c1_60 = arith.constant 1 : index
      %c0_61 = arith.constant 0 : index
      %c0_62 = arith.constant 0 : index
      %120 = vector.load %arg13[%c1_60, %c0_61, %c0_62] : memref<2x8x32xf32, #tpu.memory_space<vmem>>, vector<1x8x32xf32>
      %121 = vector.shape_cast %120 : vector<1x8x32xf32> to vector<8x32xf32>
      %122 = vector.shape_cast %116 : vector<8x32xf32> to vector<1x8x32xf32>
      tpu.vector_store %arg13[%c1_60, %c0_61, %c0_62], %122 {strides = array<i32>} : memref<2x8x32xf32, #tpu.memory_space<vmem>>, vector<1x8x32xf32>,
    } else {
    }
    %c8_i32 = arith.constant 8 : i32
    %3 = arith.muli %arg1, %c8_i32 : i32
    %4 = tpu.assume_multiple %3, 8 : i32
    %c0 = arith.constant 0 : index
    %5 = arith.index_cast %4 : i32 to index
    %c0_1 = arith.constant 0 : index
    %6 = vector.load %arg2[%c0, %5, %c0_1] : memref<1x8x32xf32, #tpu.memory_space<vmem>>, vector<1x8x32xf32>
    %7 = vector.shape_cast %6 : vector<1x8x32xf32> to vector<8x32xf32>
    %c0_2 = arith.constant 0 : index
    %c0_3 = arith.constant 0 : index
    %8 = vector.load %arg4[%c0_2, %c0_3] : memref<32x32xf32, #tpu.memory_space<vmem>>, vector<32x32xf32>
    %cst = arith.constant dense<0.000000e+00> : vector<8x32xf32>
    %9 = tpu.matmul %7, %8, %cst {dimension_numbers = #tpu.dot_dimension_numbers<[1], [1], [0], [0], [0, 0, 1, 0], [], []>} : vector<8x32xf32>, vector<32x32xf32>, vector<8x32xf32> -> vector<8x32xf32>
    %c0_4 = arith.constant 0 : index
    %c0_5 = arith.constant 0 : index
    %10 = vector.load %arg5[%c0_4, %c0_5] : memref<1x32xf32, #tpu.memory_space<vmem>>, vector<1x32xf32>
    %11 = vector.broadcast %10 : vector<1x32xf32> to vector<8x32xf32>
    %12 = arith.addf %9, %11 : vector<8x32xf32>
    %c0_6 = arith.constant 0 : index
    %c0_7 = arith.constant 0 : index
    %c0_8 = arith.constant 0 : index
    %13 = vector.load %arg3[%c0_6, %c0_7, %c0_8] : memref<1x8x8xi32, #tpu.memory_space<vmem>>, vector<1x8x8xi32>
    %14 = vector.shape_cast %13 : vector<1x8x8xi32> to vector<8x8xi32>
    %cst_9 = arith.constant dense<0> : vector<8x8xi32>
    %15 = arith.cmpi ne, %14, %cst_9 : vector<8x8xi32>
    %cst_10 = arith.constant 0.000000e+00 : f32
    %cst_11 = arith.constant -1.000000e+30 : f32
    %16 = vector.broadcast %cst_10 : f32 to vector<8x8xf32>
    %17 = vector.broadcast %cst_11 : f32 to vector<8x8xf32>
    %18 = arith.select %15, %16, %17 : vector<8x8xi1>, vector<8x8xf32>
    %c0_12 = arith.constant 0 : index
    %c0_13 = arith.constant 0 : index
    %c0_14 = arith.constant 0 : index
    %19 = vector.load %arg13[%c0_12, %c0_13, %c0_14] : memref<2x8x32xf32, #tpu.memory_space<vmem>>, vector<1x8x32xf32>
    %20 = vector.shape_cast %19 : vector<1x8x32xf32> to vector<8x32xf32>
    %c1 = arith.constant 1 : index
    %c0_15 = arith.constant 0 : index
    %c0_16 = arith.constant 0 : index
    %21 = vector.load %arg13[%c1, %c0_15, %c0_16] : memref<2x8x32xf32, #tpu.memory_space<vmem>>, vector<1x8x32xf32>
    %22 = vector.shape_cast %21 : vector<1x8x32xf32> to vector<8x32xf32>
    %c0_17 = arith.constant 0 : index
    %c0_18 = arith.constant 0 : index
    %23 = vector.load %arg10[%c0_17, %c0_18] : memref<32x32xf32, #tpu.memory_space<vmem>>, vector<32x32xf32>
    %24 = vector.extract_strided_slice %12 {offsets = [0, 0], sizes = [8, 8], strides = [1, 1]} : vector<8x32xf32> to vector<8x8xf32>
    %25 = vector.extract_strided_slice %20 {offsets = [0, 0], sizes = [8, 8], strides = [1, 1]} : vector<8x32xf32> to vector<8x8xf32>
    %cst_19 = arith.constant dense<0.000000e+00> : vector<8x8xf32>
    %26 = tpu.matmul %24, %25, %cst_19 {dimension_numbers = #tpu.dot_dimension_numbers<[1], [1], [0], [0], [0, 0, 1, 0], [], []>} : vector<8x8xf32>, vector<8x8xf32>, vector<8x8xf32> -> vector<8x8xf32>
    %27 = arith.addf %26, %18 : vector<8x8xf32>
    %cst_20 = arith.constant dense<0xFF800000> : vector<8xf32>
    %28 = vector.multi_reduction <maximumf>, %27, %cst_20 [1] : vector<8x8xf32> to vector<8xf32>
    %29 = vector.shape_cast %28 : vector<8xf32> to vector<8x1xf32>
    %30 = vector.broadcast %29 : vector<8x1xf32> to vector<8x8xf32>
    %31 = arith.subf %27, %30 : vector<8x8xf32>
    %32 = math.exp %31 : vector<8x8xf32>
    %cst_21 = arith.constant dense<0.000000e+00> : vector<8xf32>
    %33 = vector.multi_reduction <add>, %32, %cst_21 [1] : vector<8x8xf32> to vector<8xf32>
    %34 = vector.shape_cast %33 : vector<8xf32> to vector<8x1xf32>
    %35 = tpu.reciprocal %34 {approx = true} : vector<8x1xf32> -> vector<8x1xf32>
    %36 = vector.broadcast %35 : vector<8x1xf32> to vector<8x8xf32>
    %37 = arith.mulf %32, %36 : vector<8x8xf32>
    %38 = vector.extract_strided_slice %22 {offsets = [0, 0], sizes = [8, 8], strides = [1, 1]} : vector<8x32xf32> to vector<8x8xf32>
    %cst_22 = arith.constant dense<0.000000e+00> : vector<8x8xf32>
    %39 = tpu.matmul %37, %38, %cst_22 {dimension_numbers = #tpu.dot_dimension_numbers<[1], [0], [0], [1], [0, 0, 1, 1], [], []>} : vector<8x8xf32>, vector<8x8xf32>, vector<8x8xf32> -> vector<8x8xf32>
    %40 = vector.extract_strided_slice %23 {offsets = [0, 0], sizes = [32, 8], strides = [1, 1]} : vector<32x32xf32> to vector<32x8xf32>
    %cst_23 = arith.constant dense<0.000000e+00> : vector<8x32xf32>
    %41 = tpu.matmul %39, %40, %cst_23 {dimension_numbers = #tpu.dot_dimension_numbers<[1], [1], [0], [0], [0, 0, 1, 0], [], []>} : vector<8x8xf32>, vector<32x8xf32>, vector<8x32xf32> -> vector<8x32xf32>
    %42 = vector.extract_strided_slice %12 {offsets = [0, 8], sizes = [8, 8], strides = [1, 1]} : vector<8x32xf32> to vector<8x8xf32>
    %43 = vector.extract_strided_slice %20 {offsets = [0, 8], sizes = [8, 8], strides = [1, 1]} : vector<8x32xf32> to vector<8x8xf32>
    %cst_24 = arith.constant dense<0.000000e+00> : vector<8x8xf32>
    %44 = tpu.matmul %42, %43, %cst_24 {dimension_numbers = #tpu.dot_dimension_numbers<[1], [1], [0], [0], [0, 0, 1, 0], [], []>} : vector<8x8xf32>, vector<8x8xf32>, vector<8x8xf32> -> vector<8x8xf32>
    %45 = arith.addf %44, %18 : vector<8x8xf32>
    %cst_25 = arith.constant dense<0xFF800000> : vector<8xf32>
    %46 = vector.multi_reduction <maximumf>, %45, %cst_25 [1] : vector<8x8xf32> to vector<8xf32>
    %47 = vector.shape_cast %46 : vector<8xf32> to vector<8x1xf32>
    %48 = vector.broadcast %47 : vector<8x1xf32> to vector<8x8xf32>
    %49 = arith.subf %45, %48 : vector<8x8xf32>
    %50 = math.exp %49 : vector<8x8xf32>
    %cst_26 = arith.constant dense<0.000000e+00> : vector<8xf32>
    %51 = vector.multi_reduction <add>, %50, %cst_26 [1] : vector<8x8xf32> to vector<8xf32>
    %52 = vector.shape_cast %51 : vector<8xf32> to vector<8x1xf32>
    %53 = tpu.reciprocal %52 {approx = true} : vector<8x1xf32> -> vector<8x1xf32>
    %54 = vector.broadcast %53 : vector<8x1xf32> to vector<8x8xf32>
    %55 = arith.mulf %50, %54 : vector<8x8xf32>
    %56 = vector.extract_strided_slice %22 {offsets = [0, 8], sizes = [8, 8], strides = [1, 1]} : vector<8x32xf32> to vector<8x8xf32>
    %cst_27 = arith.constant dense<0.000000e+00> : vector<8x8xf32>
    %57 = tpu.matmul %55, %56, %cst_27 {dimension_numbers = #tpu.dot_dimension_numbers<[1], [0], [0], [1], [0, 0, 1, 1], [], []>} : vector<8x8xf32>, vector<8x8xf32>, vector<8x8xf32> -> vector<8x8xf32>
    %58 = vector.extract_strided_slice %23 {offsets = [0, 8], sizes = [32, 8], strides = [1, 1]} : vector<32x32xf32> to vector<32x8xf32>
    %cst_28 = arith.constant dense<0.000000e+00> : vector<8x32xf32>
    %59 = tpu.matmul %57, %58, %cst_28 {dimension_numbers = #tpu.dot_dimension_numbers<[1], [1], [0], [0], [0, 0, 1, 0], [], []>} : vector<8x8xf32>, vector<32x8xf32>, vector<8x32xf32> -> vector<8x32xf32>
    %60 = arith.addf %41, %59 : vector<8x32xf32>
    %61 = vector.extract_strided_slice %12 {offsets = [0, 16], sizes = [8, 8], strides = [1, 1]} : vector<8x32xf32> to vector<8x8xf32>
    %62 = vector.extract_strided_slice %20 {offsets = [0, 16], sizes = [8, 8], strides = [1, 1]} : vector<8x32xf32> to vector<8x8xf32>
    %cst_29 = arith.constant dense<0.000000e+00> : vector<8x8xf32>
    %63 = tpu.matmul %61, %62, %cst_29 {dimension_numbers = #tpu.dot_dimension_numbers<[1], [1], [0], [0], [0, 0, 1, 0], [], []>} : vector<8x8xf32>, vector<8x8xf32>, vector<8x8xf32> -> vector<8x8xf32>
    %64 = arith.addf %63, %18 : vector<8x8xf32>
    %cst_30 = arith.constant dense<0xFF800000> : vector<8xf32>
    %65 = vector.multi_reduction <maximumf>, %64, %cst_30 [1] : vector<8x8xf32> to vector<8xf32>
    %66 = vector.shape_cast %65 : vector<8xf32> to vector<8x1xf32>
    %67 = vector.broadcast %66 : vector<8x1xf32> to vector<8x8xf32>
    %68 = arith.subf %64, %67 : vector<8x8xf32>
    %69 = math.exp %68 : vector<8x8xf32>
    %cst_31 = arith.constant dense<0.000000e+00> : vector<8xf32>
    %70 = vector.multi_reduction <add>, %69, %cst_31 [1] : vector<8x8xf32> to vector<8xf32>
    %71 = vector.shape_cast %70 : vector<8xf32> to vector<8x1xf32>
    %72 = tpu.reciprocal %71 {approx = true} : vector<8x1xf32> -> vector<8x1xf32>
    %73 = vector.broadcast %72 : vector<8x1xf32> to vector<8x8xf32>
    %74 = arith.mulf %69, %73 : vector<8x8xf32>
    %75 = vector.extract_strided_slice %22 {offsets = [0, 16], sizes = [8, 8], strides = [1, 1]} : vector<8x32xf32> to vector<8x8xf32>
    %cst_32 = arith.constant dense<0.000000e+00> : vector<8x8xf32>
    %76 = tpu.matmul %74, %75, %cst_32 {dimension_numbers = #tpu.dot_dimension_numbers<[1], [0], [0], [1], [0, 0, 1, 1], [], []>} : vector<8x8xf32>, vector<8x8xf32>, vector<8x8xf32> -> vector<8x8xf32>
    %77 = vector.extract_strided_slice %23 {offsets = [0, 16], sizes = [32, 8], strides = [1, 1]} : vector<32x32xf32> to vector<32x8xf32>
    %cst_33 = arith.constant dense<0.000000e+00> : vector<8x32xf32>
    %78 = tpu.matmul %76, %77, %cst_33 {dimension_numbers = #tpu.dot_dimension_numbers<[1], [1], [0], [0], [0, 0, 1, 0], [], []>} : vector<8x8xf32>, vector<32x8xf32>, vector<8x32xf32> -> vector<8x32xf32>
    %79 = arith.addf %60, %78 : vector<8x32xf32>
    %80 = vector.extract_strided_slice %12 {offsets = [0, 24], sizes = [8, 8], strides = [1, 1]} : vector<8x32xf32> to vector<8x8xf32>
    %81 = vector.extract_strided_slice %20 {offsets = [0, 24], sizes = [8, 8], strides = [1, 1]} : vector<8x32xf32> to vector<8x8xf32>
    %cst_34 = arith.constant dense<0.000000e+00> : vector<8x8xf32>
    %82 = tpu.matmul %80, %81, %cst_34 {dimension_numbers = #tpu.dot_dimension_numbers<[1], [1], [0], [0], [0, 0, 1, 0], [], []>} : vector<8x8xf32>, vector<8x8xf32>, vector<8x8xf32> -> vector<8x8xf32>
    %83 = arith.addf %82, %18 : vector<8x8xf32>
    %cst_35 = arith.constant dense<0xFF800000> : vector<8xf32>
    %84 = vector.multi_reduction <maximumf>, %83, %cst_35 [1] : vector<8x8xf32> to vector<8xf32>
    %85 = vector.shape_cast %84 : vector<8xf32> to vector<8x1xf32>
    %86 = vector.broadcast %85 : vector<8x1xf32> to vector<8x8xf32>
    %87 = arith.subf %83, %86 : vector<8x8xf32>
    %88 = math.exp %87 : vector<8x8xf32>
    %cst_36 = arith.constant dense<0.000000e+00> : vector<8xf32>
    %89 = vector.multi_reduction <add>, %88, %cst_36 [1] : vector<8x8xf32> to vector<8xf32>
    %90 = vector.shape_cast %89 : vector<8xf32> to vector<8x1xf32>
    %91 = tpu.reciprocal %90 {approx = true} : vector<8x1xf32> -> vector<8x1xf32>
    %92 = vector.broadcast %91 : vector<8x1xf32> to vector<8x8xf32>
    %93 = arith.mulf %88, %92 : vector<8x8xf32>
    %94 = vector.extract_strided_slice %22 {offsets = [0, 24], sizes = [8, 8], strides = [1, 1]} : vector<8x32xf32> to vector<8x8xf32>
    %cst_37 = arith.constant dense<0.000000e+00> : vector<8x8xf32>
    %95 = tpu.matmul %93, %94, %cst_37 {dimension_numbers = #tpu.dot_dimension_numbers<[1], [0], [0], [1], [0, 0, 1, 1], [], []>} : vector<8x8xf32>, vector<8x8xf32>, vector<8x8xf32> -> vector<8x8xf32>
    %96 = vector.extract_strided_slice %23 {offsets = [0, 24], sizes = [32, 8], strides = [1, 1]} : vector<32x32xf32> to vector<32x8xf32>
    %cst_38 = arith.constant dense<0.000000e+00> : vector<8x32xf32>
    %97 = tpu.matmul %95, %96, %cst_38 {dimension_numbers = #tpu.dot_dimension_numbers<[1], [1], [0], [0], [0, 0, 1, 0], [], []>} : vector<8x8xf32>, vector<32x8xf32>, vector<8x32xf32> -> vector<8x32xf32>
    %98 = arith.addf %79, %97 : vector<8x32xf32>
    %c0_39 = arith.constant 0 : index
    %c0_40 = arith.constant 0 : index
    %99 = vector.load %arg11[%c0_39, %c0_40] : memref<1x32xf32, #tpu.memory_space<vmem>>, vector<1x32xf32>
    %100 = vector.broadcast %99 : vector<1x32xf32> to vector<8x32xf32>
    %101 = arith.addf %98, %100 : vector<8x32xf32>
    %c0_41 = arith.constant 0 : index
    %c0_42 = arith.constant 0 : index
    %c0_43 = arith.constant 0 : index
    %102 = vector.load %arg12[%c0_41, %c0_42, %c0_43] : memref<1x8x32xf32, #tpu.memory_space<vmem>>, vector<1x8x32xf32>
    %103 = vector.shape_cast %102 : vector<1x8x32xf32> to vector<8x32xf32>
    %104 = vector.shape_cast %101 : vector<8x32xf32> to vector<1x8x32xf32>
    tpu.vector_store %arg12[%c0_41, %c0_42, %c0_43], %104 {strides = array<i32>} : memref<1x8x32xf32, #tpu.memory_space<vmem>>, vector<1x8x32xf32>,
    return
  }
  func.func @transform_0(%arg0: i32, %arg1: i32) -> (i32, i32, i32) {
    %c0_i32 = arith.constant 0 : i32
    %c0_i32_0 = arith.constant 0 : i32
    %c0_i32_1 = arith.constant 0 : i32
    return %arg0, %c0_i32, %c0_i32_0 : i32, i32, i32
  }
  func.func @transform_1(%arg0: i32, %arg1: i32) -> (i32, i32, i32) {
    %c0_i32 = arith.constant 0 : i32
    %c0_i32_0 = arith.constant 0 : i32
    return %arg0, %arg1, %c0_i32 : i32, i32, i32
  }
  func.func @transform_2(%arg0: i32, %arg1: i32) -> (i32, i32) {
    %c0_i32 = arith.constant 0 : i32
    %c0_i32_0 = arith.constant 0 : i32
    %c0_i32_1 = arith.constant 0 : i32
    return %c0_i32, %c0_i32_0 : i32, i32
  }
  func.func @transform_3(%arg0: i32, %arg1: i32) -> (i32, i32) {
    %c0_i32 = arith.constant 0 : i32
    %c0_i32_0 = arith.constant 0 : i32
    %c0_i32_1 = arith.constant 0 : i32
    return %c0_i32, %c0_i32_0 : i32, i32
  }
  func.func @transform_4(%arg0: i32, %arg1: i32) -> (i32, i32) {
    %c0_i32 = arith.constant 0 : i32
    %c0_i32_0 = arith.constant 0 : i32
    %c0_i32_1 = arith.constant 0 : i32
    return %c0_i32, %c0_i32_0 : i32, i32
  }
  func.func @transform_5(%arg0: i32, %arg1: i32) -> (i32, i32) {
    %c0_i32 = arith.constant 0 : i32
    %c0_i32_0 = arith.constant 0 : i32
    %c0_i32_1 = arith.constant 0 : i32
    return %c0_i32, %c0_i32_0 : i32, i32
  }
  func.func @transform_6(%arg0: i32, %arg1: i32) -> (i32, i32) {
    %c0_i32 = arith.constant 0 : i32
    %c0_i32_0 = arith.constant 0 : i32
    %c0_i32_1 = arith.constant 0 : i32
    return %c0_i32, %c0_i32_0 : i32, i32
  }
  func.func @transform_7(%arg0: i32, %arg1: i32) -> (i32, i32) {
    %c0_i32 = arith.constant 0 : i32
    %c0_i32_0 = arith.constant 0 : i32
    %c0_i32_1 = arith.constant 0 : i32
    return %c0_i32, %c0_i32_0 : i32, i32
  }
  func.func @transform_8(%arg0: i32, %arg1: i32) -> (i32, i32) {
    %c0_i32 = arith.constant 0 : i32
    %c0_i32_0 = arith.constant 0 : i32
    %c0_i32_1 = arith.constant 0 : i32
    return %c0_i32, %c0_i32_0 : i32, i32
  }
  func.func @transform_9(%arg0: i32, %arg1: i32) -> (i32, i32) {
    %c0_i32 = arith.constant 0 : i32
    %c0_i32_0 = arith.constant 0 : i32
    %c0_i32_1 = arith.constant 0 : i32
    return %c0_i32, %c0_i32_0 : i32, i32
  }
  func.func @transform_10(%arg0: i32, %arg1: i32) -> (i32, i32, i32) {
    %c0_i32 = arith.constant 0 : i32
    %c0_i32_0 = arith.constant 0 : i32
    return %arg0, %arg1, %c0_i32 : i32, i32, i32
  }
}

</mosaic_0001>

<bundles_post_ra>
// kernel: tpu_custom_call.1
= control target key start
LH: loop header
LB: loop body
LE: loop exit
PB: predicated region body
PF: predicated region fallthrough
CT: control target
= control target key end

     0   :  { %s3138_s0 = inlined_call_operand.hbm [shape: f32[2,8,32], index: 0, kind: input, shape index: {}]   ;;  %s3139_s1 = inlined_call_operand.vmem [shape: s32[2,8,8], index: 1, kind: input, shape index: {}]   ;;  %s3140_s2 = inlined_call_operand.hbm [shape: f32[32,32], index: 2, kind: input, shape index: {}]   ;;  %s3141_s3 = inlined_call_operand.vmem [shape: f32[1,32], index: 3, kind: input, shape index: {}]   ;;  %s3142_s4 = inlined_call_operand.vmem [shape: f32[32,32], index: 4, kind: input, shape index: {}]   ;;  %s3143_s5 = inlined_call_operand.vmem [shape: f32[1,32], index: 5, kind: input, shape index: {}]   ;;  %s3144_s6 = inlined_call_operand.hbm [shape: f32[32,32], index: 6, kind: input, shape index: {}]   ;;  %s3145_s7 = inlined_call_operand.vmem [shape: f32[1,32], index: 7, kind: input, shape index: {}]   ;;  %s3146_s8 = inlined_call_operand.hbm [shape: f32[32,32], index: 8, kind: input, shape index: {}]   ;;  %s3147_s9 = inlined_call_operand.vmem [shape: f32[1,32], index: 9, kind: input, shape index: {}]   ;;  %s3148_s10 = inlined_call_operand.hbm [shape: f32[2,8,32], index: 10, kind: output, shape index: {}]  }
   0x1   :  { %3157 = sst [smem:[#allocation19_spill]] %s3139_s1 }
   0x2   :  { %3158 = sst [smem:[#allocation20_spill]] %s3145_s7 }
   0x3   :  { %3159 = sst [smem:[#allocation21_spill]] %s3147_s9 }
   0x4   :  { %3160 = sst [smem:[#allocation22_spill]] %s3148_s10 }
   0x5   :  { %15 = vsyncpa [#allocation4], 0 }
   0x6   :  { %17 = vsyncpa [#allocation4 + $0x1], 0 }
   0x7   :  { %18 = vsyncpa [#allocation7], 0 }
   0x8   :  { %19 = vsyncpa [#allocation10], 0 }
   0x9   :  { %20 = vsyncpa [#allocation5], 0 }
   0xa   :  { %22 = vsyncpa [#allocation5 + $0x1], 0  ;;  %s2647_s13 = smov 0   ;;  %s2649_s14 = smov 0  }
   0xb   :  { %s2651_s15 = smov 0   ;;  %s2653_s16 = smov 0  }
   0xc   :  { %s2655_s17 = smov 0   ;;  %s2657_s18 = smov 0  }
   0xd LB: > { %3161 = sst [smem:[#allocation16_spill]] %s2556_s13  ;;  %s1929_s19 = sadd.s32 4294967295, %s2576_s18   ;;  %s2576_s18 = sphi %s2657_s18, %s28_s18   ;;  %s2572_s17 = sphi %s2655_s17, %s3194_s17   ;;  %s2568_s16 = sphi %s2653_s16, %s3193_s16   ;;  %s2564_s15 = sphi %s2651_s15, %s3192_s15   ;;  %s2560_s14 = sphi %s2649_s14, %s3191_s14   ;;  %s2556_s13 = sphi %s2647_s13, %s3190_s13  }
   0xe   : > { %3162 = sst [smem:[#allocation17_spill]] %s2568_s16  ;;  %s1930_s20 = sadd.s32 4294967294, %s2576_s18  }
   0xf   : > { %p60_p0 = scmp.ne.s32.totalorder %s2560_s14, %s2556_s13  ;;  %p2681_p1 = scmp.eq.s32.totalorder %s1929_s19, 0 }
  0x10   : > { %p2685_p2 = scmp.eq.s32.totalorder %s1929_s19, 1  ;;  %p288_p3 = scmp.eq.s32.totalorder %s1930_s20, 1 }
  0x11   : > { %s3163_s21 = scalar_select %p2681_p1, 1, 0 }
  0x12   : > { %s3164_s22 = scalar_select %p2685_p2, 1, 0 }
  0x13   : > { %p2691_p4 = por %p2681_p1, %p60_p0  ;;  %p1931_p5 = scmp.ge.s32.totalorder %s2576_s18, 1 }
  0x14   : > { %p2696_p6 = por %p288_p3, %p60_p0  ;;  %p295_p7 = scmp.lt.s32.totalorder %s2576_s18, 3 }
  0x15   : > { %s3165_s23 = scalar_select %p2691_p4, 1, 0 }
  0x16   : > { %s3166_s24 = scalar_select %p2696_p6, 1, 0 }
  0x17   : > { %p2701_p8 = pnand %p1931_p5, %p295_p7  ;;  %s2578_s26 = smov [#allocation6]  }
  0x18   : > { %3167 = sst [smem:[#allocation18_spill]] %s3166_s24  ;;  %s307_s27 = sshll.u32 %s2578_s26, 4  ;;  %s2705_s27 = int_to_ptr.vmem [resolvable:$true] %s307_s27 }
  0x19   : > { %s3168_s25 = scalar_select %p2701_p8, 1, 0 }
  0x1a   : > { %p2240_p9 = pneg %p2701_p8  ;;  %s2579_s29 = smov [#allocation8]  }
  0x1b   : > { %s329_s30 = sshll.u32 %s2579_s29, 4  ;;  %s2580_s11 = smov [#allocation9]   ;;  %s2716_s30 = int_to_ptr.vmem [resolvable:$true] %s329_s30 }
  0x1c   : > { %p2712_p11 = pnand %p2240_p9, %p2681_p1  ;;  %s2718_s12 = sshll.u32 %s2580_s11, 4  ;;  %s346_s12 = int_to_ptr.vmem [resolvable:$true] %s2718_s12 }
  0x1d   : > { %s2372_s26 = scalar_lea.hbm %s3140_s2, 512 }
  0x1e   : > { %p2373_p12 = scmp.ne.s32.totalorder %s3140_s2, %s2372_s26  ;;  %p2728_p13 = pneg %p2712_p11 }
  0x1f   : > { %p2379_p5 = scmp.lt.u32.totalorder %s2372_s26, %s3140_s2 }
  0x20   : > { %p2375_p0 = pnand %p2728_p13, %p2373_p12 }
  0x22   : > { %p2376_p3 = pneg %p2375_p0 }
  0x24   : > { %p2381_p7 = pnand %p2379_p5, %p2376_p3 }
  0x26   : > { %2384 = shalt.err (!%p2381_p7)
}
  0x27   : > { %s2385_s13 = scalar_lea.vmem %s2705_s27, 512  ;;  %p2393_p1 = scmp.lt.s32.totalorder %s2705_s27, %s2705_s27 }
  0x28   : > { %p2386_p9 = scmp.ne.s32.totalorder %s2705_s27, %s2385_s13  ;;  %p2394_p4 = scmp.lt.s32.totalorder %s2385_s13, %s2385_s13 }
  0x2a   : > { %p2388_p10 = pnand %p2386_p9, %p2728_p13  ;;  %p2395_p12 = por %p2394_p4, %p2393_p1 }
  0x2c   : > { %p2389_p6 = pneg %p2388_p10 }
  0x2e   : > { %p2396_p0 = pnand %p2395_p12, %p2389_p6 }
  0x30   : > { %2399 = shalt.err (!%p2396_p0)
}
  0x31   : > { %s2581_s24 = smov 128   ;;  %s2582_s19 = smov 8  }
  0x32   : > { %2243 = dma.hbm_to_vmem [thread:$0]  (!%p2712_p11), %s3140_s2, 512, %s2705_s27, [#allocation7], %s2581_s24, %s2581_s24, %s2582_s19  }
  0x33   : > { %s2400_s13 = scalar_lea.hbm %s3144_s6, 512 }
  0x34   : > { %p2401_p1 = scmp.ne.s32.totalorder %s3144_s6, %s2400_s13  ;;  %p2407_p10 = scmp.lt.u32.totalorder %s2400_s13, %s3144_s6 }
  0x36   : > { %p2403_p4 = pnand %p2401_p1, %p2728_p13 }
  0x38   : > { %p2404_p6 = pneg %p2403_p4 }
  0x3a   : > { %p2409_p3 = pnand %p2407_p10, %p2404_p6 }
  0x3c   : > { %2412 = shalt.err (!%p2409_p3)
}
  0x3d   : > { %s2413_s27 = scalar_lea.vmem %s2716_s30, 512  ;;  %p2421_p12 = scmp.lt.s32.totalorder %s2716_s30, %s2716_s30 }
  0x3e   : > { %p2414_p5 = scmp.ne.s32.totalorder %s2716_s30, %s2413_s27  ;;  %p2422_p0 = scmp.lt.s32.totalorder %s2413_s27, %s2413_s27 }
  0x40   : > { %p2416_p7 = pnand %p2414_p5, %p2728_p13  ;;  %p2423_p1 = por %p2422_p0, %p2421_p12 }
  0x42   : > { %p2417_p9 = pneg %p2416_p7 }
  0x44   : > { %p2424_p4 = pnand %p2423_p1, %p2417_p9 }
  0x46   : > { %2427 = shalt.err (!%p2424_p4)
}
  0x47   : > { %2246 = dma.hbm_to_vmem [thread:$0]  (!%p2712_p11), %s3144_s6, 512, %s2716_s30, [#allocation7], %s2581_s24, %s2581_s24, %s2582_s19  }
  0x48   : > { %s2428_s20 = scalar_lea.hbm %s3146_s8, 512 }
  0x49   : > { %p2429_p6 = scmp.ne.s32.totalorder %s3146_s8, %s2428_s20  ;;  %p2435_p5 = scmp.lt.u32.totalorder %s2428_s20, %s3146_s8 }
  0x4b   : > { %p2431_p10 = pnand %p2429_p6, %p2728_p13 }
  0x4d   : > { %p2432_p3 = pneg %p2431_p10 }
  0x4f   : > { %p2437_p7 = pnand %p2435_p5, %p2432_p3 }
  0x51   : > { %2440 = shalt.err (!%p2437_p7)
}
  0x52   : > { %s2441_s27 = scalar_lea.vmem %s346_s12, 512  ;;  %p2449_p1 = scmp.lt.s32.totalorder %s346_s12, %s346_s12 }
  0x53   : > { %p2442_p9 = scmp.ne.s32.totalorder %s346_s12, %s2441_s27  ;;  %p2450_p4 = scmp.lt.s32.totalorder %s2441_s27, %s2441_s27 }
  0x55   : > { %p2444_p12 = pnand %p2442_p9, %p2728_p13  ;;  %p2451_p8 = por %p2450_p4, %p2449_p1 }
  0x57   : > { %p2445_p0 = pneg %p2444_p12 }
  0x59   : > { %p2452_p2 = pnand %p2451_p8, %p2445_p0 }
  0x5b   : > { %2455 = shalt.err (!%p2452_p2)
}
  0x5c   : > { %2249 = dma.hbm_to_vmem [thread:$0]  (!%p2712_p11), %s3146_s8, 512, %s346_s12, [#allocation10], %s2581_s24, %s2581_s24, %s2582_s19  }
  0x5d   : > { %s47_s10 = sadd.s32 1, %s2564_s15  ;;  %s40_s28 = sadd.s32 1, %s2572_s17 }
  0x5e   : > { %p54_p2 = scmp.ne.s32.totalorder %s2564_s15, %s2560_s14  ;;  %p42_p8 = scmp.ge.s32.totalorder %s40_s28, 2 }
  0x5f   : > { %p55_p13 = scmp.eq.s32.totalorder %s2576_s18, 0  ;;  %p3171_p6 = scmp.ne.s32.totalorder %s3164_s22, 0 }
  0x60   : > { %p2261_p3 = scmp.lt.s32.totalorder %s2576_s18, 2  ;;  %s3196_s28 = smov (%p42_p8, %s40_s28), 0 }
  0x61   : > { %p2807_p10 = por %p3171_p6, %p54_p2  ;;  %p56_p5 = por %p55_p13, %p54_p2 }
  0x62   : > { %s362_s9 = sand.u32 1, %s2564_s15   ;;  %s44_s16 = ssub.s32 %s2572_s17, %s3196_s28 }
  0x63   : > { %p45_p7 = scmp.eq.s32.totalorder %s44_s16, 0  ;;  %s1936_s12 = sshll.u32 %s362_s9, 3 }
  0x64   : > { %s1937_s24 = sshll.u32 %s2572_s17, 7  ;;  %s366_s29 = scalar_lea.vmem [#allocation3], %s1936_s12 }
  0x65   : > { %s2819_s19 = scalar_select %p45_p7, %s2564_s15, %s47_s10  }
  0x66   : > { %s2824_s22 = scalar_lea.hbm %s3138_s0, %s1937_s24  ;;  %s373_s11 = sshll.u32 %s366_s29, 4  ;;  %s2826_s11 = int_to_ptr.vmem [resolvable:$true] %s373_s11 }
  0x67   : > { %p2830_p11 = pnand %p2261_p3, %p56_p5  ;;  %s363_s27 = scalar_lea.sflag [#allocation4], %s362_s9 }
  0x68   : > { %s2456_s30 = scalar_lea.hbm %s2824_s22, 128  ;;  %s2461_s16 = scalar_lea.hbm %s3138_s0, 256 }
  0x69   : > { %p2457_p9 = scmp.ne.s32.totalorder %s2824_s22, %s2456_s30  ;;  %p2458_p12 = pneg %p2830_p11 }
  0x6a   : > { %p2462_p4 = scmp.lt.u32.totalorder %s2824_s22, %s3138_s0  ;;  %p2463_p2 = scmp.lt.u32.totalorder %s2461_s16, %s2456_s30 }
  0x6b   : > { %p2459_p0 = pnand %p2458_p12, %p2457_p9  ;;  %p2465_p13 = scmp.lt.u32.totalorder %s2456_s30, %s2824_s22 }
  0x6c   : > { %p2464_p8 = por %p2463_p2, %p2462_p4 }
  0x6d   : > { %p2460_p1 = pneg %p2459_p0 }
  0x6e   : > { %p2466_p6 = por %p2465_p13, %p2464_p8 }
  0x70   : > { %p2467_p3 = pnand %p2466_p6, %p2460_p1 }
  0x72   : > { %2470 = shalt.err (!%p2467_p3)
}
  0x73   : > { %s2471_s9 = scalar_lea.vmem %s2826_s11, 128  ;;  %s2583_s20 = smov [#allocation3]  }
  0x74   : > { %p2472_p5 = scmp.ne.s32.totalorder %s2826_s11, %s2471_s9  ;;  %s2476_s26 = sshll.u32 %s2583_s20, 4  ;;  %s2477_s26 = int_to_ptr.vmem [resolvable:$false] %s2476_s26 }
  0x75   : > { %s2478_s29 = scalar_lea.vmem %s2477_s26, 256  ;;  %p2479_p0 = scmp.lt.s32.totalorder %s2826_s11, %s2477_s26 }
  0x76   : > { %p2474_p7 = pnand %p2472_p5, %p2458_p12  ;;  %p2480_p4 = scmp.lt.s32.totalorder %s2478_s29, %s2471_s9 }
  0x78   : > { %p2475_p9 = pneg %p2474_p7  ;;  %p2481_p2 = por %p2480_p4, %p2479_p0 }
  0x7a   : > { %p2482_p8 = pnand %p2481_p2, %p2475_p9 }
  0x7c   : > { %2485 = shalt.err (!%p2482_p8)
}
  0x7d   : > { %2253 = dma.hbm_to_vmem [thread:$0]  (!%p2830_p11), %s2824_s22, 128, %s2826_s11, %s363_s27  }
  0x7e   : > { %p3174_p1 = scmp.ne.s32.totalorder %s3168_s25, 0 }
  0x7f   : > { %s2862_s30 = sand.u32 (!%p3174_p1), 1, %s2560_s14   ;;  %p3175_p12 = scmp.ne.s32.totalorder (!%p3174_p1), %s3165_s23, 0 }
  0x80   : > { %392 = sbr.rel (%p3174_p1) target bundleno = 3168 (0xc60), region = 60  ;;  %s1939_s1 = sshll.u32 (!%p3174_p1), %s2862_s30, 3 }
  0x81   : > { %s395_s10 = scalar_lea.sflag (!%p3174_p1), [#allocation4], %s2862_s30  ;;  %s398_s16 = scalar_lea.vmem (!%p3174_p1), [#allocation3], %s1939_s1 }
  0x87   : > { %2539 = dma.done.wait (%p3175_p12), %s395_s10, 128  }
  0x88   : > { %2541 = vsyncadd (%p3175_p12), %s395_s10, 4294967168  ;;  %p3176_p11 = scmp.ne.s32.totalorder %s3163_s21, 0 }
  0x8a   : > { %2543 = dma.done.wait (%p3176_p11), [#allocation7], 1024  }
  0x8b   : > { %2545 = vsyncadd (%p3176_p11), [#allocation7], 4294966272 }
  0x8c   : > { %2547 = dma.done.wait (%p3176_p11), [#allocation10], 512  }
  0x8d   : > { %2549 = vsyncadd (%p3176_p11), [#allocation10], 4294966784  ;;  %v2584_v0 = vmov 0.0|0.0   ;;  %vm2585_vm0 = vmmov 0   ;;  %v2586_v1 = vmov 0.0   ;;  %vm477_vm1 = vcmask 261120  }
  0x8e   : > { %2168 = vmatprep.subr.bf16.mxu0 %v2584_v0  ;;  %2059 = vmatprep.mubr.msk.f32.mxu0 %vm2585_vm0, %v2586_v1  ;;  %v466_v2 = vld [vmem:[%s3142_s4] sm:$0xff]  ;;  %v467_v3 = vld [vmem:[%s3142_s4 + $0x8] sm:$0xff]  ;;  %vm2894_vm2 = vmpackc.low %vm477_vm1, %vm477_vm1  ;;  %vm769_vm3 = vcmask 64512   ;;  %s2587_s20 = smov 120   ;;  %s3179_s10 = sld [smem:[#allocation17_spill]] }
  0x8f   : > { %2176 = vmatprep.subr.bf16.mxu1 %v2584_v0  ;;  %2070 = vmatprep.mubr.msk.f32.mxu1 %vm2585_vm0, %v2586_v1  ;;  %v2169_v5 = vpack.c.bf16 %v467_v3, %v466_v2  ;;  %v468_v6 = vld [vmem:[%s3142_s4 + $0x10] sm:$0xff]  ;;  %v469_v7 = vld [vmem:[%s3142_s4 + $0x18] sm:$0xff]  ;;  %v662_v9 = vld [vmem:[#allocation6] sm:$0xff]  ;;  %s3180_s22 = sld [smem:[#allocation19_spill]]  ;;  %v2588_v32 = vmov -1e+30  }
  0x90   : > { %v2173_v8 = vpack.c.bf16 %v469_v7, %v468_v6  ;;  %v663_v10 = vld [vmem:[#allocation6 + $0x8] sm:$0xff]  ;;  %v465_v11 = vld [vmem:[%s398_s16] sm:$0xff]  ;;  %v1945_v16 = vld [vmem:[%s3143_s5] ss:$0 sm:$0xff]  ;;  %s3181_s12 = sld [smem:[#allocation20_spill]]  ;;  %s2589_s24 = smov 112  }
  0x91   : > { %2171 = vmatpush3.bf16.xpose.msk.msra.mxu0 %vm2894_vm2, %v2169_v5  ;;  %v2185_v12 = vpack.c.bf16 %v663_v10, %v662_v9  ;;  %v664_v13 = vld [vmem:[#allocation6 + $0x10] sm:$0xff]  ;;  %v665_v14 = vld [vmem:[#allocation6 + $0x18] sm:$0xff]  ;;  %v1957_v21 = vld [vmem:[%s3141_s3] ss:$0 sm:$0xff]  ;;  %s2590_s9 = smov 104   ;;  %s3184_s29 = sld [smem:[#allocation21_spill]] }
  0x92   : > { %2172 = vmatprep.subr.bf16.mxu0 %v2584_v0  ;;  %v2189_v15 = vpack.c.bf16 %v665_v14, %v664_v13  ;;  %v563_v25 = vld [vmem:[#allocation8] sm:$0xff]  ;;  %v564_v26 = vld [vmem:[#allocation8 + $0x8] sm:$0xff]  ;;  %v565_v28 = vld [vmem:[#allocation8 + $0x10] sm:$0xff]  ;;  %s1790_s27 = scalar_lea.sflag [#allocation5], %s2862_s30 }
  0x93   : > { %v2177_v27 = vpack.c.bf16 %v564_v26, %v563_v25  ;;  %v566_v29 = vld [vmem:[#allocation8 + $0x18] sm:$0xff]  ;;  %v765_v59 = vld [vmem:[#allocation9] sm:$0xff]  ;;  %v766_v60 = vld [vmem:[#allocation9 + $0x8] sm:$0xff] }
  0x94   : > { %v2181_v30 = vpack.c.bf16 %v566_v29, %v565_v28  ;;  %p454_p13 = scmp.lt.s32.totalorder %s3179_s10, 1  ;;  %v2983_v61 = vpack.i.bf16 %v766_v60, %v765_v59  ;;  %v767_v62 = vld [vmem:[#allocation9 + $0x10] sm:$0xff]  ;;  %v768_v63 = vld [vmem:[#allocation9 + $0x18] sm:$0xff]  ;;  %vm2999_vm5 = vmpackc.low %vm769_vm3, %vm769_vm3 }
  0x95   : > { %2179 = vmatpush3.bf16.xpose.msk.msra.mxu1 %vm2894_vm2, %v2177_v27  ;;  %v2987_v2 = vpack.i.bf16 %v768_v63, %v767_v62 }
  0x96   : > { %2180 = vmatprep.subr.bf16.mxu1 %v2584_v0  ;;  %s455_s16 = scalar_select %p454_p13, %s3179_s10, 1  ;;  %v1951_v38 = vld [vmem:[%s3181_s12] ss:$0 sm:$0xff] }
  0x98   : > { %s1944_s23 = sshll.u32 %s455_s16, 3  ;;  %s1997_s16 = sshll.u32 %s3179_s10, 7 }
  0x99   : > { %2175 = vmatpush3.bf16.xpose.msk.msra.mxu0 %vm2894_vm2, %v2173_v8  ;;  %s460_s11 = scalar_lea.vmem %s3180_s22, %s1944_s23  ;;  %s453_s23 = scalar_lea.vmem [#allocation11], %s1939_s1 }
  0x9a   : > { %2184 = vmatprep.subr.bf16.mxu0 %v2584_v0  ;;  %v759_v31 = vld [vmem:[%s460_s11] sm:$0xff]  ;;  %s1804_s25 = sshll.u32 %s453_s23, 4  ;;  %s3185_s11 = sld [smem:[#allocation22_spill]]  ;;  %s3090_s25 = int_to_ptr.vmem [resolvable:$true] %s1804_s25 }
  0x9b   : > { %vm760_vm4 = vcmp.ne.s32.totalorder %v759_v31, 0  ;;  %s2486_s10 = scalar_lea.vmem %s3090_s25, 128  ;;  %s2591_s1 = smov [#allocation11]  }
  0x9c   : > { %v2958_v33 = vsel %vm760_vm4, 0.0, %v2588_v32  ;;  %p2487_p6 = scmp.ne.s32.totalorder %s3090_s25, %s2486_s10  ;;  %s2490_s12 = sshll.u32 %s2591_s1, 4  ;;  %s2491_s12 = int_to_ptr.vmem [resolvable:$false] %s2490_s12 }
  0x9d   : > { %2183 = vmatpush3.bf16.xpose.msk.msra.mxu1 %vm2894_vm2, %v2181_v30  ;;  %p2493_p7 = scmp.lt.s32.totalorder %s3090_s25, %s2491_s12 }
  0x9e   : > { %2089 = vmatprep.subr.mxu1 %v2586_v1  ;;  %p2488_p3 = pnand %p2487_p6, %p2807_p10 }
  0xa0   : > { %2060 = vmatmul.mubr.msk.f32.vlgmr.msra.gmra.mrb[0].mxu0 %vm477_vm1, %v465_v11  ;;  %s3088_s13 = scalar_lea.hbm %s3185_s11, %s1997_s16  ;;  %p2489_p5 = pneg %p2488_p3 }
  0xa1   : > { %2187 = vmatpush3.bf16.xpose.msk.msra.mxu0 %vm2894_vm2, %v2185_v12  ;;  %2081 = vmatprep.mubr.msk.f32.mxu0 %vm2585_vm0, %v2586_v1 }
  0xa2   : > { %2188 = vmatprep.subr.bf16.mxu0 %v2584_v0 }
  0xa4   : > { %2071 = vmatmul.mubr.msk.f32.vlgmr.msra.gmra.mrb[0].mxu1 %vm477_vm1, %v465_v11 }
  0xa5   : > { %2091 = vmatprep.mubr.msk.f32.mxu1 %vm2585_vm0, %v2586_v1 }
  0xa9   : > { %2191 = vmatpush3.bf16.xpose.msk.msra.mxu0 %vm2894_vm2, %v2189_v15 }
  0xaa   : > { %2084 = vmatprep.subr.mxu0 %v2586_v1 }
  0xb0   : > { %2082 = vmatmul.mubr.msk.f32.vlgmr.msra.gmra.mrb[2].mxu0 %vm477_vm1, %v465_v11 }
  0xb1   : > { %2086 = vmatprep.mubr.msk.f32.mxu0 %vm2585_vm0, %v2586_v1 }
 0x173   : > { %v559_v17 = vpop.f32.mrb[0].mxu0 }
 0x174   : > { %v560_v18 = vadd.f32 %v1945_v16, %v559_v17  ;;  %v2061_v19 = vpop.f32.mrb[1].mxu0 }
 0x176   : > { %656 = vst.msk [vmem:[#allocation2] sm:$0xff] %vm477_vm1, %v560_v18 }
 0x177   : > { %v652_v39 = vpop.f32.mrb[0].mxu1 }
 0x178   : > { %v653_v40 = vadd.f32 %v1951_v38, %v652_v39  ;;  %v2072_v41 = vpop.f32.mrb[1].mxu1 }
 0x17a   : > { %658 = vst.msk [vmem:[#allocation2 + $0x8] sm:$0xff] %vm477_vm1, %v653_v40 }
 0x17d   : > { %v2926_v20 = vld [vmem:[#allocation2] sm:$0xff] }
 0x17e   : > { %932 = vrot.lane.b32.xlu1 %v2926_v20, %s2587_s20  ;;  %2085 = vmatpush3.xpose.msk.msra.mxu0 %vm769_vm3, %v2926_v20 }
 0x17f   : > { %2192 = vmatprep.subr.bf16.mxu0 %v2584_v0 }
 0x181   : > { %v2967_v47 = vld [vmem:[#allocation2 + $0x8] sm:$0xff] }
 0x182   : > { %2090 = vmatpush3.msra.mxu1 %v2967_v47 }
 0x183   : > { %v755_v22 = vpop.f32.mrb[2].mxu0  ;;  %2094 = vmatprep.subr.mxu1 %v2586_v1 }
 0x184   : > { %v2936_v23 = vadd.f32 %v1957_v21, %v755_v22  ;;  %v2083_v24 = vpop.f32.mrb[3].mxu0  ;;  %v2201_v21 = vpack.c.bf16 %v766_v60, %v765_v59 }
 0x185   : > { %v2205_v24 = vpack.c.bf16 %v768_v63, %v767_v62 }
 0x186   : > { %930 = vrot.lane.b32.xlu1 %v2936_v23, %s2587_s20  ;;  %2087 = vmatmul.mubr.msk.f32.vlgmr.msra.gmra.mrb[4].mxu0 %vm769_vm3, %v2936_v23 }
 0x187   : > { %2112 = vmatprep.mubr.msk.f32.mxu0 %vm2585_vm0, %v2586_v1 }
 0x1f0   : > { %v933_v51 = vpop.permute.xlu1 %932 }
 0x1f8   : > { %v931_v52 = vpop.permute.xlu1 %930 }
 0x259   : > { %v842_v34 = vpop.f32.mrb[4].mxu0 }
 0x25a   : > { %v843_v35 = vadd.f32 %v842_v34, %v2958_v33  ;;  %v2088_v36 = vpop.f32.mrb[5].mxu0 }
 0x25c   : > { %v846_v37 = vsel %vm769_vm3, %v843_v35, -inf }
 0x25d   : > { %847 = vmax.xlane.f32.xlu0 %v846_v37 }
 0x2ea   : > { %v848_v42 = vpop.xlane.xlu0 %847 }
 0x2eb   : > { %v849_v43 = vsub.f32 %v843_v35, %v848_v42 }
 0x2ed   : > { %v850_v44 = vmul.f32 1.442695, %v849_v43 }
 0x2ef   : > { %2356 = vpow2.f32 %v850_v44 }
 0x2f9   : > { %v2357_v45 = vpop.eup %2356 }
 0x2fa   : > { %v852_v46 = vsel %vm769_vm3, %v2357_v45, 0.0 }
 0x2fb   : > { %853 = vadd.xlane.f32.xlu0 %v852_v46 }
 0x388   : > { %v854_v48 = vpop.xlane.xlu0 %853 }
 0x389   : > { %2358 = vrcp.f32 %v854_v48 }
 0x393   : > { %v2359_v49 = vpop.eup %2358 }
 0x394   : > { %v856_v50 = vmul.f32 %v2359_v49, %v2357_v45 }
 0x396   : > { %2092 = vmatmul.mubr.msk.f32.vlgmr.msra.gmra.mrb[2].mxu1 %vm769_vm3, %v856_v50 }
 0x397   : > { %2095 = vmatpush3.xpose.msk.msra.mxu1 %vm769_vm3, %v933_v51  ;;  %2096 = vmatprep.mubr.msk.f32.mxu1 %vm2585_vm0, %v2586_v1 }
 0x398   : > { %2099 = vmatprep.subr.mxu1 %v2586_v1 }
 0x39a   : > { %2097 = vmatmul.mubr.msk.f32.vlgmr.msra.gmra.mrb[4].mxu1 %vm769_vm3, %v931_v52 }
 0x39b   : > { %2101 = vmatprep.mubr.msk.f32.mxu1 %vm2585_vm0, %v2586_v1 }
 0x469   : > { %v926_v53 = vpop.f32.mrb[2].mxu1 }
 0x46a   : > { %v2093_v54 = vpop.f32.mrb[3].mxu1 }
 0x46d   : > { %v1004_v55 = vpop.f32.mrb[4].mxu1 }
 0x46e   : > { %v1005_v56 = vadd.f32 %v1004_v55, %v2958_v33  ;;  %v2098_v57 = vpop.f32.mrb[5].mxu1 }
 0x470   : > { %v1008_v58 = vsel %vm769_vm3, %v1005_v56, -inf }
 0x471   : > { %1009 = vmax.xlane.f32.xlu0 %v1008_v58 }
 0x487   : > { %1020 = vrot.lane.b32.xlu0 %v2967_v47, %s2587_s20 }
 0x48b   : > { %2327 = vrot.lane.b32.xlu0 %v2983_v61, %s2587_s20 }
 0x48f   : > { %2332 = vrot.lane.b32.xlu0 %v2987_v2, %s2587_s20 }
 0x493   : > { %1272 = vrot.lane.b32.xlu0 %v2926_v20, %s2589_s24 }
 0x4fe   : > { %v1010_v3 = vpop.xlane.xlu0 %1009 }
 0x4ff   : > { %v1011_v4 = vsub.f32 %v1005_v56, %v1010_v3 }
 0x501   : > { %v1012_v5 = vmul.f32 1.442695, %v1011_v4 }
 0x502   : > { %v1021_v6 = vpop.permute.xlu0 %1020 }
 0x503   : > { %2360 = vpow2.f32 %v1012_v5  ;;  %2100 = vmatpush3.msra.mxu1 %v1021_v6 }
 0x504   : > { %2200 = vmatprep.subr.bf16.mxu1 %v2584_v0 }
 0x506   : > { %v2328_v9 = vpop.permute.xlu0 %2327 }
 0x507   : > { %v2330_v10 = vunpack.i.h.bf16 %v2328_v9  ;;  %v2329_v11 = vunpack.i.l.bf16 %v2328_v9 }
 0x509   : > { %v2193_v12 = vpack.c.bf16 %v2330_v10, %v2329_v11 }
 0x50a   : > { %v2333_v13 = vpop.permute.xlu0 %2332 }
 0x50b   : > { %v2335_v15 = vunpack.i.h.bf16 %v2333_v13  ;;  %v2334_v16 = vunpack.i.l.bf16 %v2333_v13  ;;  %2195 = vmatpush3.bf16.xpose.msk.msra.mxu0 %vm2999_vm5, %v2193_v12 }
 0x50c   : > { %2196 = vmatprep.subr.bf16.mxu0 %v2584_v0 }
 0x50d   : > { %v2361_v7 = vpop.eup %2360  ;;  %v2197_v17 = vpack.c.bf16 %v2335_v15, %v2334_v16 }
 0x50e   : > { %v1014_v8 = vsel %vm769_vm3, %v2361_v7, 0.0  ;;  %v1273_v26 = vpop.permute.xlu0 %1272 }
 0x50f   : > { %1015 = vadd.xlane.f32.xlu1 %v1014_v8 }
 0x513   : > { %2199 = vmatpush3.bf16.xpose.msk.msra.mxu0 %vm2999_vm5, %v2197_v17 }
 0x514   : > { %2126 = vmatprep.subr.mxu0 %v2586_v1 }
 0x520   : > { %1270 = vrot.lane.b32.xlu1 %v2936_v23, %s2589_s24 }
 0x59c   : > { %v1016_v18 = vpop.xlane.xlu1 %1015 }
 0x59d   : > { %2362 = vrcp.f32 %v1016_v18 }
 0x5a0   : > { %v1271_v28 = vpop.permute.xlu1 %1270 }
 0x5a7   : > { %v2363_v19 = vpop.eup %2362 }
 0x5a8   : > { %v1018_v22 = vmul.f32 %v2363_v19, %v2361_v7 }
 0x5aa   : > { %2102 = vmatmul.mubr.msk.f32.vlgmr.msra.gmra.mrb[6].mxu1 %vm769_vm3, %v1018_v22  ;;  %v1995_v22 = vld [vmem:[%s3184_s29] ss:$0 sm:$0xff] }
 0x5ab   : > { %2203 = vmatpush3.bf16.xpose.msk.msra.mxu1 %vm2999_vm5, %v2201_v21  ;;  %2123 = vmatprep.mubr.msk.f32.mxu1 %vm2585_vm0, %v2586_v1 }
 0x5ac   : > { %2204 = vmatprep.subr.bf16.mxu1 %v2584_v0 }
 0x5b3   : > { %2207 = vmatpush3.bf16.xpose.msk.msra.mxu1 %vm2999_vm5, %v2205_v24 }
 0x5b4   : > { %2131 = vmatprep.subr.mxu1 %v2586_v1 }
 0x5ba   : > { %2124 = vmatmul.mubr.msk.f32.vlgmr.msra.gmra.mrb[8].mxu1 %vm769_vm3, %v926_v53 }
 0x5bb   : > { %2133 = vmatprep.mubr.msk.f32.mxu1 %vm2585_vm0, %v2586_v1 }
 0x67d   : > { %v1092_v25 = vpop.f32.mrb[6].mxu1 }
 0x67e   : > { %v2103_v27 = vpop.f32.mrb[7].mxu1  ;;  %2113 = vmatmul.mubr.msk.f32.vlgmr.msra.gmra.mrb[6].mxu0 %vm769_vm3, %v1092_v25 }
 0x67f   : > { %2127 = vmatpush3.xpose.msk.msra.mxu0 %vm769_vm3, %v1273_v26  ;;  %2128 = vmatprep.mubr.msk.f32.mxu0 %vm2585_vm0, %v2586_v1 }
 0x680   : > { %2208 = vmatprep.subr.bf16.mxu0 %v2584_v0 }
 0x682   : > { %2129 = vmatmul.mubr.msk.f32.vlgmr.msra.gmra.mrb[8].mxu0 %vm769_vm3, %v1271_v28 }
 0x683   : > { %2144 = vmatprep.mubr.msk.f32.mxu0 %vm2585_vm0, %v2586_v1 }
 0x68d   : > { %v1266_v29 = vpop.f32.mrb[8].mxu1 }
 0x68e   : > { %v2125_v30 = vpop.f32.mrb[9].mxu1 }
 0x751   : > { %v1185_v31 = vpop.f32.mrb[6].mxu0 }
 0x752   : > { %v3029_v32 = vadd.f32 %v1266_v29, %v1185_v31  ;;  %v2114_v34 = vpop.f32.mrb[7].mxu0 }
 0x755   : > { %v1344_v35 = vpop.f32.mrb[8].mxu0 }
 0x756   : > { %v1345_v36 = vadd.f32 %v1344_v35, %v2958_v33  ;;  %v2130_v37 = vpop.f32.mrb[9].mxu0 }
 0x758   : > { %v1348_v38 = vsel %vm769_vm3, %v1345_v36, -inf }
 0x759   : > { %1349 = vmax.xlane.f32.xlu0 %v1348_v38 }
 0x76f   : > { %1359 = vrot.lane.b32.xlu0 %v2967_v47, %s2589_s24 }
 0x773   : > { %1525 = vrot.lane.b32.xlu0 %v2936_v23, %s2590_s9 }
 0x7e6   : > { %v1350_v39 = vpop.xlane.xlu0 %1349 }
 0x7e7   : > { %v1351_v40 = vsub.f32 %v1345_v36, %v1350_v39 }
 0x7e9   : > { %v1352_v41 = vmul.f32 1.442695, %v1351_v40 }
 0x7ea   : > { %v1360_v42 = vpop.permute.xlu0 %1359 }
 0x7eb   : > { %2364 = vpow2.f32 %v1352_v41  ;;  %2132 = vmatpush3.msra.mxu1 %v1360_v42 }
 0x7ec   : > { %2147 = vmatprep.subr.mxu1 %v2586_v1 }
 0x7ee   : > { %v1526_v49 = vpop.permute.xlu0 %1525 }
 0x7f5   : > { %v2365_v43 = vpop.eup %2364 }
 0x7f6   : > { %v1354_v44 = vsel %vm769_vm3, %v2365_v43, 0.0 }
 0x7f7   : > { %1355 = vadd.xlane.f32.xlu1 %v1354_v44 }
 0x808   : > { %1527 = vrot.lane.b32.xlu1 %v2926_v20, %s2590_s9 }
 0x884   : > { %v1356_v45 = vpop.xlane.xlu1 %1355 }
 0x885   : > { %2366 = vrcp.f32 %v1356_v45 }
 0x888   : > { %v1528_v23 = vpop.permute.xlu1 %1527 }
 0x88f   : > { %v2367_v46 = vpop.eup %2366 }
 0x890   : > { %v1358_v48 = vmul.f32 %v2367_v46, %v2365_v43 }
 0x892   : > { %2134 = vmatmul.mubr.msk.f32.vlgmr.msra.gmra.mrb[10].mxu1 %vm769_vm3, %v1358_v48 }
 0x893   : > { %2148 = vmatpush3.xpose.msk.msra.mxu1 %vm769_vm3, %v1528_v23  ;;  %2149 = vmatprep.mubr.msk.f32.mxu1 %vm2585_vm0, %v2586_v1 }
 0x894   : > { %2152 = vmatprep.subr.mxu1 %v2586_v1 }
 0x896   : > { %2150 = vmatmul.mubr.msk.f32.vlgmr.msra.gmra.mrb[12].mxu1 %vm769_vm3, %v1526_v49 }
 0x897   : > { %2154 = vmatprep.mubr.msk.f32.mxu1 %vm2585_vm0, %v2586_v1 }
 0x965   : > { %v1431_v20 = vpop.f32.mrb[10].mxu1 }
 0x966   : > { %v2135_v50 = vpop.f32.mrb[11].mxu1 }
 0x969   : > { %v1599_v51 = vpop.f32.mrb[12].mxu1 }
 0x96a   : > { %v1600_v52 = vadd.f32 %v1599_v51, %v2958_v33  ;;  %v2151_v53 = vpop.f32.mrb[13].mxu1 }
 0x96c   : > { %v1603_v54 = vsel %vm769_vm3, %v1600_v52, -inf }
 0x96d   : > { %1604 = vmax.xlane.f32.xlu0 %v1603_v54 }
 0x983   : > { %1614 = vrot.lane.b32.xlu0 %v2967_v47, %s2590_s9 }
 0x987   : > { %2342 = vrot.lane.b32.xlu0 %v2983_v61, %s2590_s9 }
 0x98b   : > { %2347 = vrot.lane.b32.xlu0 %v2987_v2, %s2589_s24 }
 0x98f   : > { %2352 = vrot.lane.b32.xlu0 %v2987_v2, %s2590_s9 }
 0x9fa   : > { %v1605_v55 = vpop.xlane.xlu0 %1604 }
 0x9fb   : > { %v1606_v56 = vsub.f32 %v1600_v52, %v1605_v55 }
 0x9fd   : > { %v1607_v57 = vmul.f32 1.442695, %v1606_v56 }
 0x9fe   : > { %v1615_v58 = vpop.permute.xlu0 %1614 }
 0x9ff   : > { %2368 = vpow2.f32 %v1607_v57  ;;  %2153 = vmatpush3.msra.mxu1 %v1615_v58 }
 0xa00   : > { %2216 = vmatprep.subr.bf16.mxu1 %v2584_v0 }
 0xa02   : > { %v2343_v60 = vpop.permute.xlu0 %2342 }
 0xa03   : > { %v2345_v6 = vunpack.i.h.bf16 %v2343_v60  ;;  %v2344_v7 = vunpack.i.l.bf16 %v2343_v60 }
 0xa05   : > { %v2217_v10 = vpack.c.bf16 %v2345_v6, %v2344_v7 }
 0xa06   : > { %v2348_v4 = vpop.permute.xlu0 %2347 }
 0xa07   : > { %v2350_v8 = vunpack.i.h.bf16 %v2348_v4  ;;  %v2349_v9 = vunpack.i.l.bf16 %v2348_v4 }
 0xa09   : > { %v2369_v33 = vpop.eup %2368  ;;  %v2213_v12 = vpack.c.bf16 %v2350_v8, %v2349_v9 }
 0xa0a   : > { %v1609_v59 = vsel %vm769_vm3, %v2369_v33, 0.0  ;;  %v2353_v11 = vpop.permute.xlu0 %2352 }
 0xa0b   : > { %1610 = vadd.xlane.f32.xlu1 %v1609_v59  ;;  %v2355_v13 = vunpack.i.h.bf16 %v2353_v11  ;;  %v2354_v15 = vunpack.i.l.bf16 %v2353_v11 }
 0xa0d   : > { %v2221_v16 = vpack.c.bf16 %v2355_v13, %v2354_v15 }
 0xa1c   : > { %2337 = vrot.lane.b32.xlu1 %v2983_v61, %s2589_s24  ;;  %s2492_s24 = scalar_lea.vmem %s2491_s12, 256 }
 0xa1d   : > { %p2494_p9 = scmp.lt.s32.totalorder %s2492_s24, %s2486_s10 }
 0xa1f   : > { %p2495_p0 = por %p2494_p9, %p2493_p7 }
 0xa21   : > { %p2496_p4 = pnand %p2495_p0, %p2489_p5 }
 0xa98   : > { %v1611_v47 = vpop.xlane.xlu1 %1610 }
 0xa99   : > { %2370 = vrcp.f32 %v1611_v47 }
 0xa9c   : > { %v2338_v62 = vpop.permute.xlu1 %2337 }
 0xa9d   : > { %v2340_v63 = vunpack.i.h.bf16 %v2338_v62  ;;  %v2339_v3 = vunpack.i.l.bf16 %v2338_v62 }
 0xa9f   : > { %v2209_v5 = vpack.c.bf16 %v2340_v63, %v2339_v3 }
 0xaa1   : > { %2211 = vmatpush3.bf16.xpose.msk.msra.mxu0 %vm2999_vm5, %v2209_v5 }
 0xaa2   : > { %2212 = vmatprep.subr.bf16.mxu0 %v2584_v0 }
 0xaa3   : > { %v2371_v61 = vpop.eup %2370 }
 0xaa4   : > { %v1613_v2 = vmul.f32 %v2371_v61, %v2369_v33 }
 0xaa6   : > { %2155 = vmatmul.mubr.msk.f32.vlgmr.msra.gmra.mrb[14].mxu1 %vm769_vm3, %v1613_v2 }
 0xaa7   : > { %2219 = vmatpush3.bf16.xpose.msk.msra.mxu1 %vm2999_vm5, %v2217_v10  ;;  %2165 = vmatprep.mubr.msk.f32.mxu1 %vm2585_vm0, %v2586_v1 }
 0xaa8   : > { %2220 = vmatprep.subr.bf16.mxu1 %v2584_v0 }
 0xaa9   : > { %2215 = vmatpush3.bf16.xpose.msk.msra.mxu0 %vm2999_vm5, %v2213_v12 }
 0xaaf   : > { %2223 = vmatpush3.bf16.xpose.msk.msra.mxu1 %vm2999_vm5, %v2221_v16 }
 0xab0   : > { %2145 = vmatmul.mubr.msk.f32.vlgmr.msra.gmra.mrb[10].mxu0 %vm769_vm3, %v1431_v20 }
 0xb79   : > { %v1686_v17 = vpop.f32.mrb[14].mxu1 }
 0xb7a   : > { %v2156_v18 = vpop.f32.mrb[15].mxu1  ;;  %2166 = vmatmul.mubr.msk.f32.vlgmr.msra.gmra.mrb[16].mxu1 %vm769_vm3, %v1686_v17 }
 0xb83   : > { %v1520_v19 = vpop.f32.mrb[10].mxu0 }
 0xb84   : > { %v1524_v21 = vadd.f32 %v1520_v19, %v3029_v32  ;;  %v2146_v1 = vpop.f32.mrb[11].mxu0 }
 0xc4d   : > { %v1775_v0 = vpop.f32.mrb[16].mxu1 }
 0xc4e   : > { %v1779_v14 = vadd.f32 %v1775_v0, %v1524_v21  ;;  %v2167_v24 = vpop.f32.mrb[17].mxu1 }
 0xc50   : > { %v1787_v25 = vadd.f32 %v1995_v22, %v1779_v14 }
 0xc52   : > { %1788 = vst.msk [vmem:[%s453_s23] sm:$0xff] %vm477_vm1, %v1787_v25 }
 0xc53   : > { %2499 = shalt.err (!%p2496_p4)
}
 0xc54   : > { %s2500_s30 = scalar_lea.hbm %s3088_s13, 128  ;;  %s2504_s26 = scalar_lea.hbm %s3185_s11, 256 }
 0xc55   : > { %p2501_p2 = scmp.ne.s32.totalorder %s3088_s13, %s2500_s30  ;;  %p2505_p12 = scmp.lt.u32.totalorder %s3088_s13, %s3185_s11 }
 0xc56   : > { %p2506_p11 = scmp.lt.u32.totalorder %s2504_s26, %s2500_s30  ;;  %p2508_p6 = scmp.lt.u32.totalorder %s2500_s30, %s3088_s13 }
 0xc57   : > { %p2502_p8 = pnand %p2501_p2, %p2807_p10 }
 0xc58   : > { %p2507_p13 = por %p2506_p11, %p2505_p12 }
 0xc59   : > { %p2503_p1 = pneg %p2502_p8 }
 0xc5a   : > { %p2509_p3 = por %p2508_p6, %p2507_p13 }
 0xc5c   : > { %p2510_p5 = pnand %p2509_p3, %p2503_p1 }
 0xc5e   : > { %2513 = shalt.err (!%p2510_p5)
}
 0xc5f   : > { %2238 = dma.vmem_to_hbm [thread:$0]  (%p2807_p10), %s3090_s25, 128, %s3088_s13, %s1790_s27  }
 0xc60 PF: > { %s3186_s23 = sld [smem:[#allocation16_spill]]  ;;  %s3187_s21 = sld [smem:[#allocation18_spill]] }
 0xc61   : > { %p3189_p9 = scmp.ge.s32.totalorder %s2576_s18, 2 }
 0xc66   : > { %s1816_s22 = sand.u32 1, %s3186_s23   ;;  %p3188_p7 = scmp.ne.s32.totalorder %s3187_s21, 0 }
 0xc67   : > { %s1817_s10 = scalar_lea.sflag [#allocation5], %s1816_s22 }
 0xc68   : > { %p2255_p0 = pnand %p3189_p9, %p3188_p7 }
 0xc6a   : > { %2551 = dma.done.wait (!%p2255_p0), %s1817_s10, 128  }
 0xc6b   : > { %2553 = vsyncadd (!%p2255_p0), %s1817_s10, 4294967168  ;;  %s28_s18 = sadd.s32 1, %s2576_s18   ;;  %s3190_s13 = smov %s2560_s14 }
 0xc6c   : > { %p25_p4 = scmp.ge.s32.totalorder %s28_s18, 4   ;;  %s3191_s14 = smov %s2564_s15 }
 0xc6d   : > { %s3192_s15 = smov %s2819_s19  ;;  %s3193_s16 = smov %s2572_s17 }
 0xc6e   : > { %s3194_s17 = smov %s3196_s28  ;;  %27 = sbr.rel (!%p25_p4) target bundleno = 13 (0xd), region = 127 }
 0xc75   :  { %1822 = vsyncpa [#allocation4], 1 }
 0xc76   :  { %1824 = vsyncpa [#allocation4 + $0x1], 1 }
 0xc77   :  { %1825 = vsyncpa [#allocation7], 1 }
 0xc78   :  { %1826 = vsyncpa [#allocation10], 1 }
 0xc79   :  { %1827 = vsyncpa [#allocation5], 1 }
 0xc7a   :  { %1829 = vsyncpa [#allocation5 + $0x1], 1 }

</bundles_post_ra>
